<compile_context>
chip_gen: v7x
topology: tpu7x:2x2x1
jax: 0.10.0
libtpu: 0.0.40
codegen_flags: <defaults>
</compile_context>

<pallas_src>
from functools import partial

import jax
import jax.numpy as jnp
import numpy as np
from jax.experimental import pallas as pl
from jax.experimental.pallas import tpu as pltpu


_LANE = 128
_MAX_LANE_TILE = 16 * 1024          # lane tile cap (multiple of 128)
# Single-copy (input block + output block + constant rows) byte budget per
# grid step.  Pallas double-buffers, so steady-state pipeline VMEM ~= 2x this.
_BLOCK_BYTE_BUDGET = 4 << 20        # 4 MiB -> ~8 MiB pipelined (safe on v5e/v7x)


def _round_up(x: int, m: int) -> int:
    return (x + m - 1) // m * m


def _sublane_align(itemsize: int) -> int:
    # Packed-sublane granularity: f32 -> 8, bf16/f16 -> 16, int8/uint8 -> 32.
    return max(8, 32 // int(itemsize))


def _choose_tiles(rows: int, hw: int, in_itemsize: int, out_itemsize: int):
    """Pick (row_tile, lane_tile) for a lane-dense block within the byte budget."""
    lane_tile = min(_round_up(hw, _LANE), _MAX_LANE_TILE)
    # Per-row single-copy bytes: streamed input + output + the (2,·,1) f32
    # constant table (lane-padded to 128 in VMEM).
    per_row = lane_tile * (in_itemsize + out_itemsize) + 2 * _LANE * 4
    max_rows = max(1, _BLOCK_BYTE_BUDGET // per_row)
    align = max(_sublane_align(in_itemsize), _sublane_align(out_itemsize))
    if rows <= max_rows or rows <= align:
        row_tile = rows                         # full dim -> always legal
    else:
        row_tile = max(align, (max_rows // align) * align)
    return row_tile, lane_tile


def _normalize_kernel(x_ref, tbl_ref, o_ref, *, fix_unsigned: bool):
    # x_ref:   (row_tile, lane_tile) slab of flattened image rows (I/O dtype).
    # tbl_ref: (2, row_tile, 1) f32 packed constants: [0]=mean', [1]=scale'.
    x = x_ref[...].astype(jnp.float32)
    if fix_unsigned:
        # Input was bitcast uint8 -> int8 wrapper-side; undo the wrap-around.
        x = x + jnp.where(x < 0.0, 256.0, 0.0)
    mean = tbl_ref[0]      # (row_tile, 1), broadcast along lanes on the VPU
    scale = tbl_ref[1]     # (row_tile, 1) == value_scale / std (hoisted recip)
    o_ref[...] = ((x - mean) * scale).astype(o_ref.dtype)


def normalize(img: jax.Array, mean, std, *, value_scale: float = 1.0,
              out_dtype=None, inplace: bool = False,
              row_tile: int = None, lane_tile: int = None) -> jax.Array:
    """out = (img * value_scale - mean[c]) / std[c], per channel c.

    img: (N, C, H, W) or (C, H, W); float32/bfloat16/uint8.
    value_scale: fold a ToTensor-style scale (e.g. 1/255 for uint8) into the
      precomputed tables so the kernel body stays one sub + one mul.
    out_dtype: output dtype (default: img dtype if floating, else float32).
    row_tile / lane_tile: test-only overrides of the tiling heuristic.
    """
    squeeze = False
    if img.ndim == 3:
        img, squeeze = img[None], True
    N, C, H, W = img.shape

    mean_np = np.asarray(mean, dtype=np.float32).reshape(-1)
    std_np = np.asarray(std, dtype=np.float32).reshape(-1)
    if mean_np.size == 1:
        mean_np = np.full((C,), mean_np[0], np.float32)
    if std_np.size == 1:
        std_np = np.full((C,), std_np[0], np.float32)
    assert mean_np.shape == (C,) and std_np.shape == (C,)
    if np.any(std_np == 0.0):
        raise ValueError("std evaluated to zero, leading to division by zero.")

    in_dtype = jnp.dtype(img.dtype)
    is_u8 = in_dtype == jnp.dtype(jnp.uint8)
    if out_dtype is None:
        out_dtype = in_dtype if jnp.issubdtype(in_dtype, jnp.floating) else jnp.float32
    out_dtype = jnp.dtype(out_dtype)

    rows, hw = N * C, H * W
    x2 = img.reshape(rows, hw)                       # free (contiguous) reshape
    if is_u8:
        # 1 byte/elem HBM reads; signed convert is the well-trodden Mosaic path.
        x2 = jax.lax.bitcast_convert_type(x2, jnp.int8)

    # Fold value_scale into the tables: (x*vs - m)/s == (x - m/vs) * (vs/s).
    mean_fold = mean_np / np.float32(value_scale)
    scale_fold = np.float32(value_scale) / std_np
    tbl = np.stack([np.tile(mean_fold, N), np.tile(scale_fold, N)])
    tbl = jnp.asarray(tbl.reshape(2, rows, 1), dtype=jnp.float32)

    rt, lt = _choose_tiles(rows, hw, x2.dtype.itemsize, out_dtype.itemsize)
    if row_tile is not None:
        rt = row_tile
    if lane_tile is not None:
        lt = lane_tile
    grid = (pl.cdiv(rows, rt), pl.cdiv(hw, lt))

    aliases = {}
    if inplace and out_dtype == in_dtype and not is_u8:
        aliases = {0: 0}       # reuse the image buffer for the output

    out2 = pl.pallas_call(
        partial(_normalize_kernel, fix_unsigned=is_u8),
        out_shape=jax.ShapeDtypeStruct((rows, hw), out_dtype),
        grid_spec=pltpu.PrefetchScalarGridSpec(
            num_scalar_prefetch=0,
            grid=grid,
            in_specs=[
                pl.BlockSpec((rt, lt), lambda i, j: (i, j)),
                # Single packed constant table; block index only depends on i,
                # so it is re-fetched only when the row block changes.
                pl.BlockSpec((2, rt, 1), lambda i, j: (0, i, 0)),
            ],
            out_specs=pl.BlockSpec((rt, lt), lambda i, j: (i, j)),
        ),
        compiler_params=pltpu.CompilerParams(
            dimension_semantics=("parallel", "parallel"),
        ),
        input_output_aliases=aliases,
    )(x2, tbl)

    out = out2.reshape(N, C, H, W)
    return out[0] if squeeze else out


class NormalizePallas:
    """Mirror of the PyTorch Normalize transform (operates on container['img']).

    NOTE: like the original, the mask (if any) is NOT transformed.
    inplace=True is emulated via output aliasing (JAX arrays are immutable).
    """

    def __init__(self, mean, std, inplace=False):
        self.mean = mean
        self.std = std
        self.inplace = inplace

    def __call__(self, container):
        container = dict(container)
        container["img"] = normalize(container["img"], self.mean, self.std,
                                      inplace=self.inplace)
        return container


if __name__ == "__main__":
    key = jax.random.PRNGKey(0)

    # --- Test 1: primary f32 path (matches the PyTorch transform) -----------
    N, C, H, W = 2, 4, 16, 16
    img = jax.random.uniform(key, (N, C, H, W), dtype=jnp.float32)
    mean = [0.485, 0.456, 0.406, 0.5][:C]
    std = [0.229, 0.224, 0.225, 0.25][:C]

    mean_a = jnp.asarray(mean, jnp.float32).reshape(1, C, 1, 1)
    std_a = jnp.asarray(std, jnp.float32).reshape(1, C, 1, 1)
    ref = (img - mean_a) / std_a

    out = NormalizePallas(mean, std)({"img": img})["img"]
    jax.block_until_ready(out)
    assert jnp.allclose(out, ref, atol=1e-5, rtol=1e-5), "f32 mismatch"

    out_inplace = normalize(img, mean, std, inplace=True)
    jax.block_until_ready(out_inplace)
    assert jnp.allclose(out_inplace, ref, atol=1e-5, rtol=1e-5), "inplace mismatch"

    # --- Test 2: partial row/lane blocks (hw % 128 != 0, rows % row_tile != 0)
    img2 = jax.random.uniform(jax.random.PRNGKey(1), (3, 3, 15, 15), jnp.float32)
    m3, s3 = [0.485, 0.456, 0.406], [0.229, 0.224, 0.225]
    ref2 = (img2 - jnp.asarray(m3).reshape(1, 3, 1, 1)) / jnp.asarray(s3).reshape(1, 3, 1, 1)
    out2 = normalize(img2, m3, s3, row_tile=8, lane_tile=128)
    jax.block_until_ready(out2)
    assert jnp.allclose(out2, ref2, atol=1e-5, rtol=1e-5), "partial-block mismatch"

    # --- Test 3: bf16 in / bf16 out (2 B/elem each way) ----------------------
    img3 = jax.random.uniform(jax.random.PRNGKey(2), (2, 3, 16, 16), jnp.bfloat16)
    ref3 = (img3.astype(jnp.float32) - jnp.asarray(m3).reshape(1, 3, 1, 1)) \
        / jnp.asarray(s3).reshape(1, 3, 1, 1)
    out3 = normalize(img3, m3, s3)
    jax.block_until_ready(out3)
    assert out3.dtype == jnp.bfloat16
    assert jnp.allclose(out3.astype(jnp.float32), ref3, atol=2e-2, rtol=2e-2), "bf16 mismatch"

    # --- Test 4: uint8 in (1 B/elem read), folded /255, bf16 out -------------
    img4 = jax.random.randint(jax.random.PRNGKey(3), (2, 3, 16, 16), 0, 256,
                              dtype=jnp.int32).astype(jnp.uint8)
    ref4 = (img4.astype(jnp.float32) / 255.0
            - jnp.asarray(m3).reshape(1, 3, 1, 1)) / jnp.asarray(s3).reshape(1, 3, 1, 1)
    out4 = normalize(img4, m3, s3, value_scale=1.0 / 255.0, out_dtype=jnp.bfloat16)
    jax.block_until_ready(out4)
    assert out4.dtype == jnp.bfloat16
    assert jnp.allclose(out4.astype(jnp.float32), ref4, atol=2e-2, rtol=2e-2), "uint8 mismatch"

    print("KERNEL_OK")
</pallas_src>

<mosaic_0001>
module attributes {stable_mosaic.version = 11 : i64} {
  func.func @_normalize_kernel(%arg0: i32, %arg1: i32, %arg2: memref<8x256xf32, #tpu.memory_space<vmem>>, %arg3: memref<2x8x1xf32, #tpu.memory_space<vmem>>, %arg4: memref<8x256xf32, #tpu.memory_space<vmem>>) attributes {dimension_semantics = [#tpu.dimension_semantics<parallel>, #tpu.dimension_semantics<parallel>], iteration_bounds = array<i64: 1, 1>, scalar_prefetch = 0 : i64, scratch_operands = 0 : i64, tpu.core_type = #tpu.core_type<tc>, window_params = [{transform_indices = @transform_0, window_bounds = array<i64: 8, 256>}, {transform_indices = @transform_1, window_bounds = array<i64: 2, 8, 1>}, {transform_indices = @transform_2, window_bounds = array<i64: 8, 256>}]} {
    %c0 = arith.constant 0 : index
    %c0_0 = arith.constant 0 : index
    %0 = vector.load %arg2[%c0, %c0_0] : memref<8x256xf32, #tpu.memory_space<vmem>>, vector<8x256xf32>
    %c0_1 = arith.constant 0 : index
    %c0_2 = arith.constant 0 : index
    %c0_3 = arith.constant 0 : index
    %1 = vector.load %arg3[%c0_1, %c0_2, %c0_3] : memref<2x8x1xf32, #tpu.memory_space<vmem>>, vector<1x8x1xf32>
    %2 = vector.shape_cast %1 : vector<1x8x1xf32> to vector<8x1xf32>
    %c1 = arith.constant 1 : index
    %c0_4 = arith.constant 0 : index
    %c0_5 = arith.constant 0 : index
    %3 = vector.load %arg3[%c1, %c0_4, %c0_5] : memref<2x8x1xf32, #tpu.memory_space<vmem>>, vector<1x8x1xf32>
    %4 = vector.shape_cast %3 : vector<1x8x1xf32> to vector<8x1xf32>
    %5 = vector.broadcast %2 : vector<8x1xf32> to vector<8x256xf32>
    %6 = arith.subf %0, %5 : vector<8x256xf32>
    %7 = vector.broadcast %4 : vector<8x1xf32> to vector<8x256xf32>
    %8 = arith.mulf %6, %7 : vector<8x256xf32>
    %c0_6 = arith.constant 0 : index
    %c0_7 = arith.constant 0 : index
    %9 = vector.load %arg4[%c0_6, %c0_7] : memref<8x256xf32, #tpu.memory_space<vmem>>, vector<8x256xf32>
    tpu.vector_store %arg4[%c0_6, %c0_7], %8 {strides = array<i32>} : memref<8x256xf32, #tpu.memory_space<vmem>>, vector<8x256xf32>,
    return
  }
  func.func @transform_0(%arg0: i32, %arg1: i32) -> (i32, i32) {
    %c0_i32 = arith.constant 0 : i32
    return %arg0, %arg1 : i32, i32
  }
  func.func @transform_1(%arg0: i32, %arg1: i32) -> (i32, i32, i32) {
    %c0_i32 = arith.constant 0 : i32
    %c0_i32_0 = arith.constant 0 : i32
    %c0_i32_1 = arith.constant 0 : i32
    return %c0_i32, %arg0, %c0_i32_0 : i32, i32, i32
  }
  func.func @transform_2(%arg0: i32, %arg1: i32) -> (i32, i32) {
    %c0_i32 = arith.constant 0 : i32
    return %arg0, %arg1 : i32, i32
  }
}

</mosaic_0001>

<bundles_post_ra>
// kernel: tpu_custom_call.1
= control target key start
LH: loop header
LB: loop body
LE: loop exit
PB: predicated region body
PF: predicated region fallthrough
CT: control target
= control target key end

     0   :  { %s116_s0 = inlined_call_operand.vmem [shape: f32[8,256], index: 0, kind: input, shape index: {}]   ;;  %s117_s1 = inlined_call_operand.vmem [shape: f32[2,8,1], index: 1, kind: input, shape index: {}]   ;;  %s118_s2 = inlined_call_operand.hbm [shape: f32[8,256], index: 2, kind: output, shape index: {}]  }
   0x1   :  { %v14_v0 = vld [vmem:[%s117_s1] sm:$0xff] }
   0x2   :  { %7 = vsyncpa [#allocation3], 0  ;;  %v75_v1 = vmov 0   ;;  %v47_v2 = vld [vmem:[%s117_s1 + $0x8] sm:$0xff]  ;;  %v12_v4 = vld [vmem:[%s116_s0] sm:$0xff]  ;;  %s76_s17 = smov [#allocation2]  }
   0x3   :  { %50 = vset.pattern.permute.xlu0 %v75_v1  ;;  %v13_v5 = vld [vmem:[%s116_s0 + $0x8] sm:$0xff]  ;;  %s39_s18 = sshll.u32 %s76_s17, 4  ;;  %s40_s18 = int_to_ptr.vmem [resolvable:$true] %s39_s18 }
   0x4   :  { %19 = vperm.xlu0 %50, %v14_v0   ;;  %s51_s1 = scalar_lea.vmem %s40_s18, 256  ;;  %p56_p1 = scmp.lt.s32.totalorder %s40_s18, %s40_s18 }
   0x5   :  { %p52_p0 = scmp.ne.s32.totalorder %s40_s18, %s51_s1  ;;  %p57_p2 = scmp.lt.s32.totalorder %s51_s1, %s51_s1 }
   0x7   :  { %p58_p3 = por %p57_p2, %p56_p1 }
   0x8   :  { %26 = vperm.xlu0 %50, %v47_v2  }
   0x9   :  { %p59_p4 = pnand %p58_p3, %p52_p0 }
  0x83   :  { %v20_v3 = vpop.permute.xlu0 %19 }
  0x84   :  { %v22_v6 = vsub.f32 %v12_v4, %v20_v3  ;;  %v23_v7 = vsub.f32 %v13_v5, %v20_v3 }
  0x87   :  { %v27_v8 = vpop.permute.xlu0 %26 }
  0x88   :  { %v29_v9 = vmul.f32 %v27_v8, %v22_v6  ;;  %v30_v10 = vmul.f32 %v27_v8, %v23_v7 }
  0x8a   :  { %31 = vst [vmem:[#allocation2] sm:$0xff] %v29_v9  ;;  %32 = vst [vmem:[#allocation2 + $0x8] sm:$0xff] %v30_v10 }
  0x8b   :  { %62 = shalt.err (!%p59_p4)
}
  0x8c   :  { %s63_s0 = scalar_lea.hbm %s118_s2, 256 }
  0x8d   :  { %p64_p5 = scmp.ne.s32.totalorder %s118_s2, %s63_s0  ;;  %p67_p6 = scmp.lt.u32.totalorder %s63_s0, %s118_s2 }
  0x8f   :  { %p69_p7 = pnand %p67_p6, %p64_p5 }
  0x91   :  { %72 = shalt.err (!%p69_p7)
}
  0x92   :  { %42 = dma.vmem_to_hbm [thread:$0]  %s40_s18, 256, %s118_s2, [#allocation3]  }
  0x93   :  { %73 = dma.done.wait [#allocation3], 256  }
  0x94   :  { %74 = vsyncadd [#allocation3], 4294967040 }
  0x95   :  { %46 = vsyncpa [#allocation3], 1 }

</bundles_post_ra>
